<compile_context>
chip_gen: v5e
topology: v5e:2x2
jax: 0.10.0
libtpu: 0.0.40
codegen_flags: <defaults>
</compile_context>

<pallas_src>
import functools

import jax
import jax.numpy as jnp
import numpy as np
from jax.experimental import pallas as pl
from jax.experimental.pallas import tpu as pltpu


def _timnet_kernel(x_ref, win_ref, wc01_ref, wrs_ref, wouts_ref, o_ref, *,
                   Bt, L, R, S, dilations):
    BtL = Bt * L
    OCS = wouts_ref.shape[1]

    # conv_in (1x1, no bias): (R, Cin) @ (Cin, Bt*L) -> (R, Bt*L).
    h = jnp.dot(win_ref[...], x_ref[...], preferred_element_type=jnp.float32)

    skips = jnp.zeros((R, BtL), jnp.float32)
    for i, d in enumerate(dilations):
        # Fused causal-conv taps: wc01[i] = [tap(t-d); tap(t)]  (one MXU push).
        yz = jnp.dot(wc01_ref[i], h, preferred_element_type=jnp.float32)  # (2R, BtL)
        # Causal dilated shift: columns are t*Bt + b, so a time shift of d is a
        # lane shift of d*Bt with zeros fed in (== causal zero padding).
        sh = d * Bt
        shifted = jnp.concatenate(
            [jnp.zeros((R, sh), jnp.float32), yz[:R, :BtL - sh]], axis=1)
        y = shifted + yz[R:]
        # Gated activation; sigmoid via tanh keeps it at 2 EUP ops / element.
        g = jnp.tanh(y) * (0.5 * jnp.tanh(0.5 * y) + 0.5)
        # Fused residual | skip 1x1 convs: wrs[i] = [W_res; W_skip] (one push).
        rs = jnp.dot(wrs_ref[i], g, preferred_element_type=jnp.float32)   # (2R, BtL)
        h = rs[:R] + h
        skips = skips + rs[R:]

    # Epilogue: ReLU, take the last S timesteps (the last S*Bt lanes, which are
    # contiguous), and apply the final Linear as S accumulated
    # (OCS, R) @ (R, Bt) dots -> (OCS, Bt).
    sk = jnp.maximum(skips, 0.0)
    t0 = L - S
    acc = jnp.zeros((OCS, Bt), jnp.float32)
    for s in range(S):
        tail_s = sk[:, (t0 + s) * Bt:(t0 + s + 1) * Bt]                   # (R, Bt)
        acc = acc + jnp.dot(wouts_ref[s], tail_s,
                            preferred_element_type=jnp.float32)
    o_ref[0] = acc                                                        # (OCS, Bt)


def compute_dilations(in_length, dilation_factor=2):
    dil, rf, d = [], 1, 1
    while rf < in_length:
        dil.append(d)
        rf += d
        d *= dilation_factor
    return dil


def _default_batch_tile(B, L):
    """One grid step on single-TC chips (v5e/v6e); >=2 parallel steps on v7x."""
    multi_tc = False
    try:
        kind = jax.devices()[0].device_kind.lower()
        multi_tc = ("v7" in kind) or ("7x" in kind)
    except Exception:
        pass
    if multi_tc and B % 2 == 0 and ((B // 2) * L) % 128 == 0:
        return B // 2
    return B


def timnet_pallas(x, params, *, skip_length, out_channels, dilations,
                  batch_tile=None):
    """TimNet forward.  x: (B, Cin, L) float32 in PyTorch NCL layout."""
    W_in, Wc, Wr, Ws, W_out = params
    B, Cin, L = x.shape
    R = W_in.shape[0]
    S = skip_length
    OC = out_channels
    OCS = OC * S
    Nb = len(dilations)
    assert S <= L and (Nb == 0 or max(dilations) < L)

    if batch_tile is None:
        batch_tile = _default_batch_tile(B, L)
    Bt = batch_tile
    assert B % Bt == 0, "batch must be divisible by batch_tile"
    nb = B // Bt
    assert Bt == B or (Bt * L) % 128 == 0, (
        "batch_tile*L must be a multiple of 128 when tiling the batch")

    # --- host-side re-layout (cheap XLA transposes) --------------------------
    # x -> (Cin, B*L) with columns ordered (tile, t, b_in_tile): each grid step
    # gets a contiguous, lane-dense column block and time shifts become lane
    # shifts inside the kernel.
    x_k = (x.reshape(nb, Bt, Cin, L)
             .transpose(2, 0, 3, 1)
             .reshape(Cin, B * L))
    win_k = W_in[:, :, 0]                                              # (R, Cin)
    # Fused causal-conv taps stacked on sublanes: [tap for h[t-d]; tap for h[t]].
    wc01_k = jnp.stack(
        [jnp.concatenate([Wc[i][:, :, 0], Wc[i][:, :, 1]], axis=0)
         for i in range(Nb)])                                          # (Nb, 2R, R)
    # Residual | skip 1x1 convs stacked on sublanes.
    wrs_k = jnp.stack(
        [jnp.concatenate([Wr[i][:, :, 0], Ws[i][:, :, 0]], axis=0)
         for i in range(Nb)])                                          # (Nb, 2R, R)
    # Final Linear split per skip timestep: wouts[s, o, r] = W_out[o, r*S + s]
    # (PyTorch's Flatten of the (R, S) slab is channel-major).
    wouts_k = W_out.reshape(OCS, R, S).transpose(2, 0, 1)              # (S, OCS, R)

    kernel = functools.partial(_timnet_kernel, Bt=Bt, L=L, R=R, S=S,
                               dilations=tuple(dilations))

    out_t = pl.pallas_call(
        kernel,
        out_shape=jax.ShapeDtypeStruct((nb, OCS, Bt), jnp.float32),
        grid=(nb,),
        in_specs=[
            pl.BlockSpec((Cin, Bt * L), lambda i: (0, i)),
            pl.BlockSpec((R, Cin), lambda i: (0, 0)),
            pl.BlockSpec((Nb, 2 * R, R), lambda i: (0, 0, 0)),
            pl.BlockSpec((Nb, 2 * R, R), lambda i: (0, 0, 0)),
            pl.BlockSpec((S, OCS, R), lambda i: (0, 0, 0)),
        ],
        out_specs=pl.BlockSpec((1, OCS, Bt), lambda i: (i, 0, 0)),
        compiler_params=pltpu.CompilerParams(
            dimension_semantics=("parallel",)),
    )(x_k, win_k, wc01_k, wrs_k, wouts_k)

    # (nb, OCS, Bt) -> (nb, Bt, OCS) -> (B, OC, S), matching torch's .view.
    return out_t.transpose(0, 2, 1).reshape(B, OC, S)


# --- pure-JAX reference mirroring the PyTorch module (for verification) ------
def ref_forward(x, W_in, Wc, Wr, Ws, W_out, dilations, skip_length, out_channels):
    hi = jax.lax.Precision.HIGHEST
    h = jnp.einsum('oc,bcl->bol', W_in[:, :, 0], x, precision=hi)
    L = h.shape[-1]
    skips = jnp.zeros_like(h)
    for (wc, wr, ws), d in zip(zip(Wc, Wr, Ws), dilations):
        h_prev = jnp.pad(h, ((0, 0), (0, 0), (d, 0)))[:, :, :L]
        y = (jnp.einsum('oc,bcl->bol', wc[:, :, 0], h_prev, precision=hi)
             + jnp.einsum('oc,bcl->bol', wc[:, :, 1], h, precision=hi))
        g = jnp.tanh(y) * jax.nn.sigmoid(y)
        skips = skips + jnp.einsum('oc,bcl->bol', ws[:, :, 0], g, precision=hi)
        h = jnp.einsum('oc,bcl->bol', wr[:, :, 0], g, precision=hi) + h
    sk = jnp.maximum(skips[:, :, -skip_length:], 0.0)
    flat = sk.reshape(sk.shape[0], -1)          # channel-major flatten, as torch
    out = jnp.dot(flat, W_out.T, precision=hi)
    return out.reshape(-1, out_channels, skip_length)


if __name__ == "__main__":
    # Small shapes consistent with the module.
    B, Cin, L = 16, 4, 16         # batch, in_channels, in_length
    R, S, OC = 16, 8, 3           # res_channels, skip_length, out_channels
    dilations = compute_dilations(L, dilation_factor=2)   # [1, 2, 4, 8]
    Nb = len(dilations)

    key = jax.random.PRNGKey(0)
    kx, kwin, kwout, *kblocks = jax.random.split(key, 3 + 3 * Nb)

    x = jax.random.normal(kx, (B, Cin, L), jnp.float32)
    W_in = jax.random.normal(kwin, (R, Cin, 1), jnp.float32) * 0.3
    W_out = jax.random.normal(kwout, (OC * S, R * S), jnp.float32) * 0.1
    Wc, Wr, Ws = [], [], []
    for i in range(Nb):
        k1, k2, k3 = kblocks[3 * i:3 * i + 3]
        Wc.append(jax.random.normal(k1, (R, R, 2), jnp.float32) * 0.25)
        Wr.append(jax.random.normal(k2, (R, R, 1), jnp.float32) * 0.25)
        Ws.append(jax.random.normal(k3, (R, R, 1), jnp.float32) * 0.25)

    params = (W_in, Wc, Wr, Ws, W_out)

    ref = jax.block_until_ready(
        ref_forward(x, W_in, Wc, Wr, Ws, W_out, dilations, S, OC))

    # Default (generation-aware) tiling: grid=1 on single-TC v5e/v6e, two
    # parallel steps on multi-TC v7x.
    out = jax.block_until_ready(
        timnet_pallas(x, params, skip_length=S, out_channels=OC,
                      dilations=dilations))
    np.testing.assert_allclose(np.asarray(out), np.asarray(ref),
                               rtol=3e-3, atol=3e-3)

    # Explicitly exercise the multi-step (v7x-style) grid path as well:
    # batch_tile=8 -> grid=(2,), 128-lane working tiles.
    out2 = jax.block_until_ready(
        timnet_pallas(x, params, skip_length=S, out_channels=OC,
                      dilations=dilations, batch_tile=8))
    np.testing.assert_allclose(np.asarray(out2), np.asarray(ref),
                               rtol=3e-3, atol=3e-3)

    print("KERNEL_OK")
</pallas_src>

<mosaic_0001>
module attributes {stable_mosaic.version = 11 : i64} {
  func.func @_timnet_kernel(%arg0: i32, %arg1: memref<4x256xf32, #tpu.memory_space<vmem>>, %arg2: memref<16x4xf32, #tpu.memory_space<vmem>>, %arg3: memref<4x32x16xf32, #tpu.memory_space<vmem>>, %arg4: memref<4x32x16xf32, #tpu.memory_space<vmem>>, %arg5: memref<8x24x16xf32, #tpu.memory_space<vmem>>, %arg6: memref<1x24x16xf32, #tpu.memory_space<vmem>>) attributes {dimension_semantics = [#tpu.dimension_semantics<parallel>], iteration_bounds = array<i64: 1>, scalar_prefetch = 0 : i64, scratch_operands = 0 : i64, tpu.core_type = #tpu.core_type<tc>, window_params = [{transform_indices = @transform_0, window_bounds = array<i64: 4, 256>}, {pipeline_mode = #tpu.pipeline_mode<synchronous>, transform_indices = @transform_1, window_bounds = array<i64: 16, 4>}, {pipeline_mode = #tpu.pipeline_mode<synchronous>, transform_indices = @transform_2, window_bounds = array<i64: 4, 32, 16>}, {pipeline_mode = #tpu.pipeline_mode<synchronous>, transform_indices = @transform_3, window_bounds = array<i64: 4, 32, 16>}, {pipeline_mode = #tpu.pipeline_mode<synchronous>, transform_indices = @transform_4, window_bounds = array<i64: 8, 24, 16>}, {transform_indices = @transform_5, window_bounds = array<i64: 1, 24, 16>}]} {
    %c0 = arith.constant 0 : index
    %c0_0 = arith.constant 0 : index
    %0 = vector.load %arg2[%c0, %c0_0] : memref<16x4xf32, #tpu.memory_space<vmem>>, vector<16x4xf32>
    %c0_1 = arith.constant 0 : index
    %c0_2 = arith.constant 0 : index
    %1 = vector.load %arg1[%c0_1, %c0_2] : memref<4x256xf32, #tpu.memory_space<vmem>>, vector<4x256xf32>
    %cst = arith.constant dense<0.000000e+00> : vector<16x256xf32>
    %2 = tpu.matmul %0, %1, %cst {dimension_numbers = #tpu.dot_dimension_numbers<[1], [0], [0], [1], [0, 0, 1, 1], [], []>} : vector<16x4xf32>, vector<4x256xf32>, vector<16x256xf32> -> vector<16x256xf32>
    %cst_3 = arith.constant 0.000000e+00 : f32
    %3 = vector.broadcast %cst_3 : f32 to vector<16x256xf32>
    %c0_4 = arith.constant 0 : index
    %c0_5 = arith.constant 0 : index
    %c0_6 = arith.constant 0 : index
    %4 = vector.load %arg3[%c0_4, %c0_5, %c0_6] : memref<4x32x16xf32, #tpu.memory_space<vmem>>, vector<1x32x16xf32>
    %5 = vector.shape_cast %4 : vector<1x32x16xf32> to vector<32x16xf32>
    %cst_7 = arith.constant dense<0.000000e+00> : vector<32x256xf32>
    %6 = tpu.matmul %5, %2, %cst_7 {dimension_numbers = #tpu.dot_dimension_numbers<[1], [0], [0], [1], [0, 0, 1, 1], [], []>} : vector<32x16xf32>, vector<16x256xf32>, vector<32x256xf32> -> vector<32x256xf32>
    %cst_8 = arith.constant 0.000000e+00 : f32
    %7 = vector.broadcast %cst_8 : f32 to vector<16x16xf32>
    %8 = vector.extract_strided_slice %6 {offsets = [0, 0], sizes = [16, 240], strides = [1, 1]} : vector<32x256xf32> to vector<16x240xf32>
    %9 = tpu.concatenate %7, %8 in 1 : vector<16x16xf32>, vector<16x240xf32> -> vector<16x256xf32>
    %10 = vector.extract_strided_slice %6 {offsets = [16, 0], sizes = [16, 256], strides = [1, 1]} : vector<32x256xf32> to vector<16x256xf32>
    %11 = arith.addf %9, %10 : vector<16x256xf32>
    %12 = math.tanh %11 : vector<16x256xf32>
    %cst_9 = arith.constant 5.000000e-01 : f32
    %13 = vector.broadcast %cst_9 : f32 to vector<16x256xf32>
    %14 = arith.mulf %13, %11 : vector<16x256xf32>
    %15 = math.tanh %14 : vector<16x256xf32>
    %cst_10 = arith.constant 5.000000e-01 : f32
    %16 = vector.broadcast %cst_10 : f32 to vector<16x256xf32>
    %17 = arith.mulf %16, %15 : vector<16x256xf32>
    %cst_11 = arith.constant 5.000000e-01 : f32
    %18 = vector.broadcast %cst_11 : f32 to vector<16x256xf32>
    %19 = arith.addf %17, %18 : vector<16x256xf32>
    %20 = arith.mulf %12, %19 : vector<16x256xf32>
    %c0_12 = arith.constant 0 : index
    %c0_13 = arith.constant 0 : index
    %c0_14 = arith.constant 0 : index
    %21 = vector.load %arg4[%c0_12, %c0_13, %c0_14] : memref<4x32x16xf32, #tpu.memory_space<vmem>>, vector<1x32x16xf32>
    %22 = vector.shape_cast %21 : vector<1x32x16xf32> to vector<32x16xf32>
    %cst_15 = arith.constant dense<0.000000e+00> : vector<32x256xf32>
    %23 = tpu.matmul %22, %20, %cst_15 {dimension_numbers = #tpu.dot_dimension_numbers<[1], [0], [0], [1], [0, 0, 1, 1], [], []>} : vector<32x16xf32>, vector<16x256xf32>, vector<32x256xf32> -> vector<32x256xf32>
    %24 = vector.extract_strided_slice %23 {offsets = [0, 0], sizes = [16, 256], strides = [1, 1]} : vector<32x256xf32> to vector<16x256xf32>
    %25 = arith.addf %24, %2 : vector<16x256xf32>
    %26 = vector.extract_strided_slice %23 {offsets = [16, 0], sizes = [16, 256], strides = [1, 1]} : vector<32x256xf32> to vector<16x256xf32>
    %27 = arith.addf %3, %26 : vector<16x256xf32>
    %c1 = arith.constant 1 : index
    %c0_16 = arith.constant 0 : index
    %c0_17 = arith.constant 0 : index
    %28 = vector.load %arg3[%c1, %c0_16, %c0_17] : memref<4x32x16xf32, #tpu.memory_space<vmem>>, vector<1x32x16xf32>
    %29 = vector.shape_cast %28 : vector<1x32x16xf32> to vector<32x16xf32>
    %cst_18 = arith.constant dense<0.000000e+00> : vector<32x256xf32>
    %30 = tpu.matmul %29, %25, %cst_18 {dimension_numbers = #tpu.dot_dimension_numbers<[1], [0], [0], [1], [0, 0, 1, 1], [], []>} : vector<32x16xf32>, vector<16x256xf32>, vector<32x256xf32> -> vector<32x256xf32>
    %cst_19 = arith.constant 0.000000e+00 : f32
    %31 = vector.broadcast %cst_19 : f32 to vector<16x32xf32>
    %32 = vector.extract_strided_slice %30 {offsets = [0, 0], sizes = [16, 224], strides = [1, 1]} : vector<32x256xf32> to vector<16x224xf32>
    %33 = tpu.concatenate %31, %32 in 1 : vector<16x32xf32>, vector<16x224xf32> -> vector<16x256xf32>
    %34 = vector.extract_strided_slice %30 {offsets = [16, 0], sizes = [16, 256], strides = [1, 1]} : vector<32x256xf32> to vector<16x256xf32>
    %35 = arith.addf %33, %34 : vector<16x256xf32>
    %36 = math.tanh %35 : vector<16x256xf32>
    %cst_20 = arith.constant 5.000000e-01 : f32
    %37 = vector.broadcast %cst_20 : f32 to vector<16x256xf32>
    %38 = arith.mulf %37, %35 : vector<16x256xf32>
    %39 = math.tanh %38 : vector<16x256xf32>
    %cst_21 = arith.constant 5.000000e-01 : f32
    %40 = vector.broadcast %cst_21 : f32 to vector<16x256xf32>
    %41 = arith.mulf %40, %39 : vector<16x256xf32>
    %cst_22 = arith.constant 5.000000e-01 : f32
    %42 = vector.broadcast %cst_22 : f32 to vector<16x256xf32>
    %43 = arith.addf %41, %42 : vector<16x256xf32>
    %44 = arith.mulf %36, %43 : vector<16x256xf32>
    %c1_23 = arith.constant 1 : index
    %c0_24 = arith.constant 0 : index
    %c0_25 = arith.constant 0 : index
    %45 = vector.load %arg4[%c1_23, %c0_24, %c0_25] : memref<4x32x16xf32, #tpu.memory_space<vmem>>, vector<1x32x16xf32>
    %46 = vector.shape_cast %45 : vector<1x32x16xf32> to vector<32x16xf32>
    %cst_26 = arith.constant dense<0.000000e+00> : vector<32x256xf32>
    %47 = tpu.matmul %46, %44, %cst_26 {dimension_numbers = #tpu.dot_dimension_numbers<[1], [0], [0], [1], [0, 0, 1, 1], [], []>} : vector<32x16xf32>, vector<16x256xf32>, vector<32x256xf32> -> vector<32x256xf32>
    %48 = vector.extract_strided_slice %47 {offsets = [0, 0], sizes = [16, 256], strides = [1, 1]} : vector<32x256xf32> to vector<16x256xf32>
    %49 = arith.addf %48, %25 : vector<16x256xf32>
    %50 = vector.extract_strided_slice %47 {offsets = [16, 0], sizes = [16, 256], strides = [1, 1]} : vector<32x256xf32> to vector<16x256xf32>
    %51 = arith.addf %27, %50 : vector<16x256xf32>
    %c2 = arith.constant 2 : index
    %c0_27 = arith.constant 0 : index
    %c0_28 = arith.constant 0 : index
    %52 = vector.load %arg3[%c2, %c0_27, %c0_28] : memref<4x32x16xf32, #tpu.memory_space<vmem>>, vector<1x32x16xf32>
    %53 = vector.shape_cast %52 : vector<1x32x16xf32> to vector<32x16xf32>
    %cst_29 = arith.constant dense<0.000000e+00> : vector<32x256xf32>
    %54 = tpu.matmul %53, %49, %cst_29 {dimension_numbers = #tpu.dot_dimension_numbers<[1], [0], [0], [1], [0, 0, 1, 1], [], []>} : vector<32x16xf32>, vector<16x256xf32>, vector<32x256xf32> -> vector<32x256xf32>
    %cst_30 = arith.constant 0.000000e+00 : f32
    %55 = vector.broadcast %cst_30 : f32 to vector<16x64xf32>
    %56 = vector.extract_strided_slice %54 {offsets = [0, 0], sizes = [16, 192], strides = [1, 1]} : vector<32x256xf32> to vector<16x192xf32>
    %57 = tpu.concatenate %55, %56 in 1 : vector<16x64xf32>, vector<16x192xf32> -> vector<16x256xf32>
    %58 = vector.extract_strided_slice %54 {offsets = [16, 0], sizes = [16, 256], strides = [1, 1]} : vector<32x256xf32> to vector<16x256xf32>
    %59 = arith.addf %57, %58 : vector<16x256xf32>
    %60 = math.tanh %59 : vector<16x256xf32>
    %cst_31 = arith.constant 5.000000e-01 : f32
    %61 = vector.broadcast %cst_31 : f32 to vector<16x256xf32>
    %62 = arith.mulf %61, %59 : vector<16x256xf32>
    %63 = math.tanh %62 : vector<16x256xf32>
    %cst_32 = arith.constant 5.000000e-01 : f32
    %64 = vector.broadcast %cst_32 : f32 to vector<16x256xf32>
    %65 = arith.mulf %64, %63 : vector<16x256xf32>
    %cst_33 = arith.constant 5.000000e-01 : f32
    %66 = vector.broadcast %cst_33 : f32 to vector<16x256xf32>
    %67 = arith.addf %65, %66 : vector<16x256xf32>
    %68 = arith.mulf %60, %67 : vector<16x256xf32>
    %c2_34 = arith.constant 2 : index
    %c0_35 = arith.constant 0 : index
    %c0_36 = arith.constant 0 : index
    %69 = vector.load %arg4[%c2_34, %c0_35, %c0_36] : memref<4x32x16xf32, #tpu.memory_space<vmem>>, vector<1x32x16xf32>
    %70 = vector.shape_cast %69 : vector<1x32x16xf32> to vector<32x16xf32>
    %cst_37 = arith.constant dense<0.000000e+00> : vector<32x256xf32>
    %71 = tpu.matmul %70, %68, %cst_37 {dimension_numbers = #tpu.dot_dimension_numbers<[1], [0], [0], [1], [0, 0, 1, 1], [], []>} : vector<32x16xf32>, vector<16x256xf32>, vector<32x256xf32> -> vector<32x256xf32>
    %72 = vector.extract_strided_slice %71 {offsets = [0, 0], sizes = [16, 256], strides = [1, 1]} : vector<32x256xf32> to vector<16x256xf32>
    %73 = arith.addf %72, %49 : vector<16x256xf32>
    %74 = vector.extract_strided_slice %71 {offsets = [16, 0], sizes = [16, 256], strides = [1, 1]} : vector<32x256xf32> to vector<16x256xf32>
    %75 = arith.addf %51, %74 : vector<16x256xf32>
    %c3 = arith.constant 3 : index
    %c0_38 = arith.constant 0 : index
    %c0_39 = arith.constant 0 : index
    %76 = vector.load %arg3[%c3, %c0_38, %c0_39] : memref<4x32x16xf32, #tpu.memory_space<vmem>>, vector<1x32x16xf32>
    %77 = vector.shape_cast %76 : vector<1x32x16xf32> to vector<32x16xf32>
    %cst_40 = arith.constant dense<0.000000e+00> : vector<32x256xf32>
    %78 = tpu.matmul %77, %73, %cst_40 {dimension_numbers = #tpu.dot_dimension_numbers<[1], [0], [0], [1], [0, 0, 1, 1], [], []>} : vector<32x16xf32>, vector<16x256xf32>, vector<32x256xf32> -> vector<32x256xf32>
    %cst_41 = arith.constant 0.000000e+00 : f32
    %79 = vector.broadcast %cst_41 : f32 to vector<16x128xf32>
    %80 = vector.extract_strided_slice %78 {offsets = [0, 0], sizes = [16, 128], strides = [1, 1]} : vector<32x256xf32> to vector<16x128xf32>
    %81 = tpu.concatenate %79, %80 in 1 : vector<16x128xf32>, vector<16x128xf32> -> vector<16x256xf32>
    %82 = vector.extract_strided_slice %78 {offsets = [16, 0], sizes = [16, 256], strides = [1, 1]} : vector<32x256xf32> to vector<16x256xf32>
    %83 = arith.addf %81, %82 : vector<16x256xf32>
    %84 = math.tanh %83 : vector<16x256xf32>
    %cst_42 = arith.constant 5.000000e-01 : f32
    %85 = vector.broadcast %cst_42 : f32 to vector<16x256xf32>
    %86 = arith.mulf %85, %83 : vector<16x256xf32>
    %87 = math.tanh %86 : vector<16x256xf32>
    %cst_43 = arith.constant 5.000000e-01 : f32
    %88 = vector.broadcast %cst_43 : f32 to vector<16x256xf32>
    %89 = arith.mulf %88, %87 : vector<16x256xf32>
    %cst_44 = arith.constant 5.000000e-01 : f32
    %90 = vector.broadcast %cst_44 : f32 to vector<16x256xf32>
    %91 = arith.addf %89, %90 : vector<16x256xf32>
    %92 = arith.mulf %84, %91 : vector<16x256xf32>
    %c3_45 = arith.constant 3 : index
    %c0_46 = arith.constant 0 : index
    %c0_47 = arith.constant 0 : index
    %93 = vector.load %arg4[%c3_45, %c0_46, %c0_47] : memref<4x32x16xf32, #tpu.memory_space<vmem>>, vector<1x32x16xf32>
    %94 = vector.shape_cast %93 : vector<1x32x16xf32> to vector<32x16xf32>
    %cst_48 = arith.constant dense<0.000000e+00> : vector<32x256xf32>
    %95 = tpu.matmul %94, %92, %cst_48 {dimension_numbers = #tpu.dot_dimension_numbers<[1], [0], [0], [1], [0, 0, 1, 1], [], []>} : vector<32x16xf32>, vector<16x256xf32>, vector<32x256xf32> -> vector<32x256xf32>
    %96 = vector.extract_strided_slice %95 {offsets = [16, 0], sizes = [16, 256], strides = [1, 1]} : vector<32x256xf32> to vector<16x256xf32>
    %97 = arith.addf %75, %96 : vector<16x256xf32>
    %cst_49 = arith.constant 0.000000e+00 : f32
    %98 = vector.broadcast %cst_49 : f32 to vector<16x256xf32>
    %99 = arith.maximumf %97, %98 : vector<16x256xf32>
    %cst_50 = arith.constant 0.000000e+00 : f32
    %100 = vector.broadcast %cst_50 : f32 to vector<24x16xf32>
    %101 = vector.extract_strided_slice %99 {offsets = [0, 128], sizes = [16, 16], strides = [1, 1]} : vector<16x256xf32> to vector<16x16xf32>
    %c0_51 = arith.constant 0 : index
    %c0_52 = arith.constant 0 : index
    %c0_53 = arith.constant 0 : index
    %102 = vector.load %arg5[%c0_51, %c0_52, %c0_53] : memref<8x24x16xf32, #tpu.memory_space<vmem>>, vector<1x24x16xf32>
    %103 = vector.shape_cast %102 : vector<1x24x16xf32> to vector<24x16xf32>
    %cst_54 = arith.constant dense<0.000000e+00> : vector<24x16xf32>
    %104 = tpu.matmul %103, %101, %cst_54 {dimension_numbers = #tpu.dot_dimension_numbers<[1], [0], [0], [1], [0, 0, 1, 1], [], []>} : vector<24x16xf32>, vector<16x16xf32>, vector<24x16xf32> -> vector<24x16xf32>
    %105 = arith.addf %100, %104 : vector<24x16xf32>
    %106 = vector.extract_strided_slice %99 {offsets = [0, 144], sizes = [16, 16], strides = [1, 1]} : vector<16x256xf32> to vector<16x16xf32>
    %c1_55 = arith.constant 1 : index
    %c0_56 = arith.constant 0 : index
    %c0_57 = arith.constant 0 : index
    %107 = vector.load %arg5[%c1_55, %c0_56, %c0_57] : memref<8x24x16xf32, #tpu.memory_space<vmem>>, vector<1x24x16xf32>
    %108 = vector.shape_cast %107 : vector<1x24x16xf32> to vector<24x16xf32>
    %cst_58 = arith.constant dense<0.000000e+00> : vector<24x16xf32>
    %109 = tpu.matmul %108, %106, %cst_58 {dimension_numbers = #tpu.dot_dimension_numbers<[1], [0], [0], [1], [0, 0, 1, 1], [], []>} : vector<24x16xf32>, vector<16x16xf32>, vector<24x16xf32> -> vector<24x16xf32>
    %110 = arith.addf %105, %109 : vector<24x16xf32>
    %111 = vector.extract_strided_slice %99 {offsets = [0, 160], sizes = [16, 16], strides = [1, 1]} : vector<16x256xf32> to vector<16x16xf32>
    %c2_59 = arith.constant 2 : index
    %c0_60 = arith.constant 0 : index
    %c0_61 = arith.constant 0 : index
    %112 = vector.load %arg5[%c2_59, %c0_60, %c0_61] : memref<8x24x16xf32, #tpu.memory_space<vmem>>, vector<1x24x16xf32>
    %113 = vector.shape_cast %112 : vector<1x24x16xf32> to vector<24x16xf32>
    %cst_62 = arith.constant dense<0.000000e+00> : vector<24x16xf32>
    %114 = tpu.matmul %113, %111, %cst_62 {dimension_numbers = #tpu.dot_dimension_numbers<[1], [0], [0], [1], [0, 0, 1, 1], [], []>} : vector<24x16xf32>, vector<16x16xf32>, vector<24x16xf32> -> vector<24x16xf32>
    %115 = arith.addf %110, %114 : vector<24x16xf32>
    %116 = vector.extract_strided_slice %99 {offsets = [0, 176], sizes = [16, 16], strides = [1, 1]} : vector<16x256xf32> to vector<16x16xf32>
    %c3_63 = arith.constant 3 : index
    %c0_64 = arith.constant 0 : index
    %c0_65 = arith.constant 0 : index
    %117 = vector.load %arg5[%c3_63, %c0_64, %c0_65] : memref<8x24x16xf32, #tpu.memory_space<vmem>>, vector<1x24x16xf32>
    %118 = vector.shape_cast %117 : vector<1x24x16xf32> to vector<24x16xf32>
    %cst_66 = arith.constant dense<0.000000e+00> : vector<24x16xf32>
    %119 = tpu.matmul %118, %116, %cst_66 {dimension_numbers = #tpu.dot_dimension_numbers<[1], [0], [0], [1], [0, 0, 1, 1], [], []>} : vector<24x16xf32>, vector<16x16xf32>, vector<24x16xf32> -> vector<24x16xf32>
    %120 = arith.addf %115, %119 : vector<24x16xf32>
    %121 = vector.extract_strided_slice %99 {offsets = [0, 192], sizes = [16, 16], strides = [1, 1]} : vector<16x256xf32> to vector<16x16xf32>
    %c4 = arith.constant 4 : index
    %c0_67 = arith.constant 0 : index
    %c0_68 = arith.constant 0 : index
    %122 = vector.load %arg5[%c4, %c0_67, %c0_68] : memref<8x24x16xf32, #tpu.memory_space<vmem>>, vector<1x24x16xf32>
    %123 = vector.shape_cast %122 : vector<1x24x16xf32> to vector<24x16xf32>
    %cst_69 = arith.constant dense<0.000000e+00> : vector<24x16xf32>
    %124 = tpu.matmul %123, %121, %cst_69 {dimension_numbers = #tpu.dot_dimension_numbers<[1], [0], [0], [1], [0, 0, 1, 1], [], []>} : vector<24x16xf32>, vector<16x16xf32>, vector<24x16xf32> -> vector<24x16xf32>
    %125 = arith.addf %120, %124 : vector<24x16xf32>
    %126 = vector.extract_strided_slice %99 {offsets = [0, 208], sizes = [16, 16], strides = [1, 1]} : vector<16x256xf32> to vector<16x16xf32>
    %c5 = arith.constant 5 : index
    %c0_70 = arith.constant 0 : index
    %c0_71 = arith.constant 0 : index
    %127 = vector.load %arg5[%c5, %c0_70, %c0_71] : memref<8x24x16xf32, #tpu.memory_space<vmem>>, vector<1x24x16xf32>
    %128 = vector.shape_cast %127 : vector<1x24x16xf32> to vector<24x16xf32>
    %cst_72 = arith.constant dense<0.000000e+00> : vector<24x16xf32>
    %129 = tpu.matmul %128, %126, %cst_72 {dimension_numbers = #tpu.dot_dimension_numbers<[1], [0], [0], [1], [0, 0, 1, 1], [], []>} : vector<24x16xf32>, vector<16x16xf32>, vector<24x16xf32> -> vector<24x16xf32>
    %130 = arith.addf %125, %129 : vector<24x16xf32>
    %131 = vector.extract_strided_slice %99 {offsets = [0, 224], sizes = [16, 16], strides = [1, 1]} : vector<16x256xf32> to vector<16x16xf32>
    %c6 = arith.constant 6 : index
    %c0_73 = arith.constant 0 : index
    %c0_74 = arith.constant 0 : index
    %132 = vector.load %arg5[%c6, %c0_73, %c0_74] : memref<8x24x16xf32, #tpu.memory_space<vmem>>, vector<1x24x16xf32>
    %133 = vector.shape_cast %132 : vector<1x24x16xf32> to vector<24x16xf32>
    %cst_75 = arith.constant dense<0.000000e+00> : vector<24x16xf32>
    %134 = tpu.matmul %133, %131, %cst_75 {dimension_numbers = #tpu.dot_dimension_numbers<[1], [0], [0], [1], [0, 0, 1, 1], [], []>} : vector<24x16xf32>, vector<16x16xf32>, vector<24x16xf32> -> vector<24x16xf32>
    %135 = arith.addf %130, %134 : vector<24x16xf32>
    %136 = vector.extract_strided_slice %99 {offsets = [0, 240], sizes = [16, 16], strides = [1, 1]} : vector<16x256xf32> to vector<16x16xf32>
    %c7 = arith.constant 7 : index
    %c0_76 = arith.constant 0 : index
    %c0_77 = arith.constant 0 : index
    %137 = vector.load %arg5[%c7, %c0_76, %c0_77] : memref<8x24x16xf32, #tpu.memory_space<vmem>>, vector<1x24x16xf32>
    %138 = vector.shape_cast %137 : vector<1x24x16xf32> to vector<24x16xf32>
    %cst_78 = arith.constant dense<0.000000e+00> : vector<24x16xf32>
    %139 = tpu.matmul %138, %136, %cst_78 {dimension_numbers = #tpu.dot_dimension_numbers<[1], [0], [0], [1], [0, 0, 1, 1], [], []>} : vector<24x16xf32>, vector<16x16xf32>, vector<24x16xf32> -> vector<24x16xf32>
    %140 = arith.addf %135, %139 : vector<24x16xf32>
    %c0_79 = arith.constant 0 : index
    %c0_80 = arith.constant 0 : index
    %c0_81 = arith.constant 0 : index
    %141 = vector.load %arg6[%c0_79, %c0_80, %c0_81] : memref<1x24x16xf32, #tpu.memory_space<vmem>>, vector<1x24x16xf32>
    %142 = vector.shape_cast %141 : vector<1x24x16xf32> to vector<24x16xf32>
    %143 = vector.shape_cast %140 : vector<24x16xf32> to vector<1x24x16xf32>
    tpu.vector_store %arg6[%c0_79, %c0_80, %c0_81], %143 {strides = array<i32>} : memref<1x24x16xf32, #tpu.memory_space<vmem>>, vector<1x24x16xf32>,
    return
  }
  func.func @transform_0(%arg0: i32) -> (i32, i32) {
    %c0_i32 = arith.constant 0 : i32
    %c0_i32_0 = arith.constant 0 : i32
    return %c0_i32, %arg0 : i32, i32
  }
  func.func @transform_1(%arg0: i32) -> (i32, i32) {
    %c0_i32 = arith.constant 0 : i32
    %c0_i32_0 = arith.constant 0 : i32
    %c0_i32_1 = arith.constant 0 : i32
    return %c0_i32, %c0_i32_0 : i32, i32
  }
  func.func @transform_2(%arg0: i32) -> (i32, i32, i32) {
    %c0_i32 = arith.constant 0 : i32
    %c0_i32_0 = arith.constant 0 : i32
    %c0_i32_1 = arith.constant 0 : i32
    %c0_i32_2 = arith.constant 0 : i32
    return %c0_i32, %c0_i32_0, %c0_i32_1 : i32, i32, i32
  }
  func.func @transform_3(%arg0: i32) -> (i32, i32, i32) {
    %c0_i32 = arith.constant 0 : i32
    %c0_i32_0 = arith.constant 0 : i32
    %c0_i32_1 = arith.constant 0 : i32
    %c0_i32_2 = arith.constant 0 : i32
    return %c0_i32, %c0_i32_0, %c0_i32_1 : i32, i32, i32
  }
  func.func @transform_4(%arg0: i32) -> (i32, i32, i32) {
    %c0_i32 = arith.constant 0 : i32
    %c0_i32_0 = arith.constant 0 : i32
    %c0_i32_1 = arith.constant 0 : i32
    %c0_i32_2 = arith.constant 0 : i32
    return %c0_i32, %c0_i32_0, %c0_i32_1 : i32, i32, i32
  }
  func.func @transform_5(%arg0: i32) -> (i32, i32, i32) {
    %c0_i32 = arith.constant 0 : i32
    %c0_i32_0 = arith.constant 0 : i32
    %c0_i32_1 = arith.constant 0 : i32
    return %arg0, %c0_i32, %c0_i32_0 : i32, i32, i32
  }
}

</mosaic_0001>

<bundles_post_ra>
// kernel: tpu_custom_call.1
= control target key start
LH: loop header
LB: loop body
LE: loop exit
PB: predicated region body
PF: predicated region fallthrough
CT: control target
= control target key end

     0   :  { %vm34_vm0 = vcmask 1043456   ;;  %vm27_vm1 = vcmask 31744   ;;  %vm89_vm2 = vcmask 130048   ;;  %s1439_s30 = smov 16   ;;  %s1440_s18 = smov 32   ;;  %vm373_vm3 = vcmask 261120   ;;  %s1833_s0 = inlined_call_operand.vmem [shape: f32[4,256], index: 0, kind: input, shape index: {}]   ;;  %s1834_s1 = inlined_call_operand.vmem [shape: f32[16,4], index: 1, kind: input, shape index: {}]   ;;  %s1835_s2 = inlined_call_operand.vmem [shape: f32[4,32,16], index: 2, kind: input, shape index: {}]   ;;  %s1836_s3 = inlined_call_operand.vmem [shape: f32[4,32,16], index: 3, kind: input, shape index: {}]   ;;  %s1837_s4 = inlined_call_operand.vmem [shape: f32[8,24,16], index: 4, kind: input, shape index: {}]   ;;  %s1838_s5 = inlined_call_operand.vmem [shape: f32[1,24,16], index: 5, kind: output, shape index: {}]  }
   0x1   :  { %v22_v0 = vld [vmem:[%s1833_s0] sm:$0xff]  ;;  %v21_v4 = vld [vmem:[%s1834_s1 + $0x8] sm:$0xff]  ;;  %v87_v11 = vld [vmem:[%s1835_s2 + $0x10] sm:$0xff]  ;;  %s1441_s13 = smov 64   ;;  %vm576_vm4 = vcmask 523264   ;;  %s1443_s12 = smov 96  }
   0x2   :  { %24 = vst [vmem:[#allocation1] ss:$2 sm:$0xff] %v22_v0  ;;  %v20_v1 = vld [vmem:[%s1834_s1] sm:$0xff]  ;;  %v86_v10 = vld [vmem:[%s1835_s2 + $0x8] sm:$0xff]  ;;  %v88_v12 = vld [vmem:[%s1835_s2 + $0x18] sm:$0xff]  ;;  %s1444_s14 = smov 112  }
   0x3   :  { %v85_v8 = vld [vmem:[%s1835_s2] sm:$0xff]  ;;  %v209_v58 = vld [vmem:[%s1836_s3 + $0x8] sm:$0xff]  ;;  %s1445_s15 = smov 48  }
   0x4   :  { %v208_v48 = vld [vmem:[%s1836_s3] sm:$0xff] }
   0x5   :  { %v1227_v0 = vld [vmem:[%s1835_s2 + $0x20] sm:$0xff] }
   0x9   :  { %v25_v2 = vld.sshfl [vmem:[#allocation1] sm:$0xff pattern:$0x75316420]  ;;  %v26_v3 = vld.sshfl [vmem:[#allocation1 + $0x8] sm:$0xff pattern:$0x75316420] }
   0xa   :  { %1205 = vmatpush.msk.msra.mxu0 %vm34_vm0, %v25_v2  ;;  %1340 = vmatpush.msk.msra.mxu1 %vm34_vm0, %v26_v3 }
   0xb   :  { %1206 = vmatmul.msk.f32.vlgmr.msra.gmra.mxu0 %vm27_vm1, %v20_v1  ;;  %1210 = vmatmul.msk.f32.vlgmr.msra.gmra.mxu1 %vm27_vm1, %v21_v4 }
   0xc   :  { %1208 = vmatpush.msk.msrb.mxu0 %vm34_vm0, %v26_v3 }
  0x13   :  { %1207 = vmatmul.msk.f32.gmra.mxu0 %vm27_vm1, %v21_v4  ;;  %v1228_v4 = vld [vmem:[%s1835_s2 + $0x28] sm:$0xff] }
  0x1b   :  { %1209 = vmatmul.msk.f32.vlgmr.msrb.gmra.mxu0 %vm27_vm1, %v20_v1 }
  0x88   :  { %v1485_v5 = vpop.f32.mrf.mxu0  ;;  %v1487_v6 = vpop.f32.mrf.mxu1 }
  0x89   :  { %145 = vmatpush.msra.mxu3 %v1487_v6 }
  0x90   :  { %v1490_v7 = vpop.f32.mrf.mxu0 }
  0x91   :  { %116 = vmatpush.msra.mxu2 %v1490_v7 }
  0x93   :  { %117 = vmatpush.msra.mxu2 %v1485_v5 }
  0x94   :  { %1211 = vmatmul.msk.f32.vlgmr.msra.gmra.mxu2 %vm89_vm2, %v85_v8 }
  0x98   :  { %v1498_v9 = vpop.f32.mrf.mxu0 }
  0x99   :  { %146 = vmatpush.msra.mxu3 %v1498_v9 }
  0x9a   :  { %1215 = vmatmul.msk.f32.vlgmr.msra.gmra.mxu3 %vm89_vm2, %v85_v8 }
  0x9c   :  { %1212 = vmatmul.msk.f32.gmra.mxu2 %vm89_vm2, %v86_v10 }
  0xa2   :  { %1216 = vmatmul.msk.f32.gmra.mxu3 %vm89_vm2, %v86_v10 }
  0xa4   :  { %1213 = vmatmul.msk.f32.gmra.mxu2 %vm89_vm2, %v87_v11 }
  0xaa   :  { %1217 = vmatmul.msk.f32.gmra.mxu3 %vm89_vm2, %v87_v11  ;;  %v210_v11 = vld [vmem:[%s1836_s3 + $0x10] sm:$0xff] }
  0xac   :  { %1214 = vmatmul.msk.f32.gmra.mxu2 %vm89_vm2, %v88_v12 }
  0xb2   :  { %1218 = vmatmul.msk.f32.gmra.mxu3 %vm89_vm2, %v88_v12 }
 0x117   :  { %v119_v13 = vpop.f32.mrf.mxu2 }
 0x118   :  { %164 = vrot.lane.b32.xlu1 %v119_v13, %s1439_s30  ;;  %v211_v13 = vld [vmem:[%s1836_s3 + $0x18] sm:$0xff] }
 0x11d   :  { %v148_v14 = vpop.f32.mrf.mxu3 }
 0x11f   :  { %v122_v15 = vpop.f32.mrf.mxu2 }
 0x120   :  { %168 = vrot.lane.b32.xlu0 %v122_v15, %s1439_s30  ;;  %166 = vrot.lane.b32.xlu1 %v148_v14, %s1439_s30 }
 0x125   :  { %v151_v16 = vpop.f32.mrf.mxu3 }
 0x127   :  { %v125_v17 = vpop.f32.mrf.mxu2 }
 0x128   :  { %170 = vrot.lane.b32.xlu0 %v151_v16, %s1439_s30 }
 0x12d   :  { %v154_v21 = vpop.f32.mrf.mxu3 }
 0x12f   :  { %v128_v23 = vpop.f32.mrf.mxu2 }
 0x135   :  { %v157_v32 = vpop.f32.mrf.mxu3 }
 0x18a   :  { %v165_v18 = vpop.permute.xlu1 %164 }
 0x18b   :  { %v178_v19 = vsel %vm89_vm2, 0.0, %v165_v18 }
 0x18c   :  { %v180_v20 = vadd.f32 %v178_v19, %v125_v17 }
 0x18e   :  { %v188_v22 = vmul.f32 0.5, %v180_v20 }
 0x190   :  { %1383 = vtanh.f32 %v188_v22 }
 0x192   :  { %v169_v24 = vpop.permute.xlu0 %168  ;;  %v167_v25 = vpop.permute.xlu1 %166 }
 0x193   :  { %v179_v26 = vsel %vm89_vm2, 0.0, %v169_v24  ;;  %v172_v27 = vsel %vm89_vm2, %v165_v18, %v167_v25 }
 0x194   :  { %v182_v28 = vadd.f32 %v179_v26, %v128_v23  ;;  %v181_v29 = vadd.f32 %v172_v27, %v154_v21 }
 0x196   :  { %v190_v30 = vmul.f32 0.5, %v182_v28  ;;  %v189_v31 = vmul.f32 0.5, %v181_v29  ;;  %v1384_v33 = vpop.eup %1383 }
 0x197   :  { %v196_v37 = vmul.f32 0.5, %v1384_v33 }
 0x198   :  { %1385 = vtanh.f32 %v190_v30 }
 0x199   :  { %1387 = vtanh.f32 %v182_v28  ;;  %v200_v42 = vadd.f32 0.5, %v196_v37 }
 0x19a   :  { %v171_v34 = vpop.permute.xlu0 %170  ;;  %1389 = vtanh.f32 %v189_v31 }
 0x19b   :  { %v173_v35 = vsel %vm89_vm2, %v169_v24, %v171_v34  ;;  %1391 = vtanh.f32 %v180_v20 }
 0x19c   :  { %v183_v36 = vadd.f32 %v173_v35, %v157_v32 }
 0x19e   :  { %v1386_v38 = vpop.eup %1385  ;;  %v191_v39 = vmul.f32 0.5, %v183_v36 }
 0x19f   :  { %v198_v40 = vmul.f32 0.5, %v1386_v38  ;;  %v1388_v41 = vpop.eup %1387 }
 0x1a0   :  { %1393 = vtanh.f32 %v191_v39  ;;  %v1390_v44 = vpop.eup %1389 }
 0x1a1   :  { %v202_v43 = vadd.f32 0.5, %v198_v40  ;;  %v1392_v46 = vpop.eup %1391  ;;  %1395 = vtanh.f32 %v183_v36  ;;  %v197_v49 = vmul.f32 0.5, %v1390_v44 }
 0x1a2   :  { %v204_v47 = vmul.f32 %v1392_v46, %v200_v42  ;;  %1397 = vtanh.f32 %v181_v29 }
 0x1a3   :  { %v206_v45 = vmul.f32 %v1388_v41, %v202_v43  ;;  %v201_v53 = vadd.f32 0.5, %v197_v49 }
 0x1a5   :  { %238 = vmatpush.msra.mxu0 %v206_v45 }
 0x1a6   :  { %v1394_v50 = vpop.eup %1393 }
 0x1a7   :  { %239 = vmatpush.msra.mxu0 %v204_v47  ;;  %v199_v51 = vmul.f32 0.5, %v1394_v50  ;;  %v1396_v54 = vpop.eup %1395 }
 0x1a8   :  { %1219 = vmatmul.msk.f32.vlgmr.msra.gmra.mxu0 %vm89_vm2, %v208_v48  ;;  %v1398_v56 = vpop.eup %1397 }
 0x1a9   :  { %v203_v52 = vadd.f32 0.5, %v199_v51  ;;  %v205_v57 = vmul.f32 %v1398_v56, %v201_v53  ;;  %v1242_v56 = vld [vmem:[%s1836_s3 + $0x38] sm:$0xff] }
 0x1ab   :  { %v207_v55 = vmul.f32 %v1396_v54, %v203_v52  ;;  %v1240_v54 = vld [vmem:[%s1836_s3 + $0x28] sm:$0xff] }
 0x1ad   :  { %265 = vmatpush.msrb.mxu1 %v207_v55  ;;  %v1241_v55 = vld [vmem:[%s1836_s3 + $0x30] sm:$0xff] }
 0x1af   :  { %266 = vmatpush.msrb.mxu1 %v205_v57 }
 0x1b0   :  { %1220 = vmatmul.msk.f32.gmra.mxu0 %vm89_vm2, %v209_v58  ;;  %1223 = vmatmul.msk.f32.vlgmr.msrb.gmra.mxu1 %vm89_vm2, %v208_v48  ;;  %v1239_v48 = vld [vmem:[%s1836_s3 + $0x20] sm:$0xff] }
 0x1b8   :  { %1224 = vmatmul.msk.f32.gmra.mxu1 %vm89_vm2, %v209_v58  ;;  %1221 = vmatmul.msk.f32.gmra.mxu0 %vm89_vm2, %v210_v11 }
 0x1c0   :  { %1225 = vmatmul.msk.f32.gmra.mxu1 %vm89_vm2, %v210_v11  ;;  %1222 = vmatmul.msk.f32.gmra.mxu0 %vm89_vm2, %v211_v13 }
 0x1c8   :  { %1226 = vmatmul.msk.f32.gmra.mxu1 %vm89_vm2, %v211_v13 }
 0x225   :  { %v241_v59 = vpop.f32.mrf.mxu0 }
 0x226   :  { %v1539_v63 = vadd.f32 %v241_v59, %v1485_v5  ;;  %v1229_v5 = vld [vmem:[%s1835_s2 + $0x30] sm:$0xff] }
 0x22d   :  { %v244_v60 = vpop.f32.mrf.mxu0  ;;  %v268_v61 = vpop.f32.mrf.mxu1 }
 0x22e   :  { %v1536_v62 = vadd.f32 %v244_v60, %v1490_v7  ;;  %v1551_v3 = vadd.f32 %v268_v61, %v1498_v9 }
 0x230   :  { %317 = vmatpush.msrb.mxu2 %v1536_v62 }
 0x232   :  { %318 = vmatpush.msrb.mxu2 %v1539_v63 }
 0x233   :  { %1231 = vmatmul.msk.f32.vlgmr.msrb.gmra.mxu2 %vm89_vm2, %v1227_v0 }
 0x235   :  { %v271_v1 = vpop.f32.mrf.mxu1  ;;  %v247_v57 = vpop.f32.mrf.mxu0 }
 0x236   :  { %v1548_v2 = vadd.f32 %v271_v1, %v1487_v6  ;;  %v1230_v6 = vld [vmem:[%s1835_s2 + $0x38] sm:$0xff] }
 0x238   :  { %346 = vmatpush.msrb.mxu3 %v1548_v2 }
 0x23a   :  { %347 = vmatpush.msrb.mxu3 %v1551_v3 }
 0x23b   :  { %1232 = vmatmul.msk.f32.gmra.mxu2 %vm89_vm2, %v1228_v4  ;;  %1235 = vmatmul.msk.f32.vlgmr.msrb.gmra.mxu3 %vm89_vm2, %v1227_v0 }
 0x23d   :  { %v249_v58 = vpop.f32.mrf.mxu0  ;;  %v274_v59 = vpop.f32.mrf.mxu1 }
 0x243   :  { %1236 = vmatmul.msk.f32.gmra.mxu3 %vm89_vm2, %v1228_v4  ;;  %1233 = vmatmul.msk.f32.gmra.mxu2 %vm89_vm2, %v1229_v5 }
 0x245   :  { %v1609_v60 = vpop.f32.mrf.mxu1 }
 0x24b   :  { %1237 = vmatmul.msk.f32.gmra.mxu3 %vm89_vm2, %v1229_v5  ;;  %1234 = vmatmul.msk.f32.gmra.mxu2 %vm89_vm2, %v1230_v6 }
 0x253   :  { %1238 = vmatmul.msk.f32.gmra.mxu3 %vm89_vm2, %v1230_v6  ;;  %v1251_v6 = vld [vmem:[%s1835_s2 + $0x40] sm:$0xff] }
 0x2b6   :  { %v320_v7 = vpop.f32.mrf.mxu2 }
 0x2b7   :  { %365 = vrot.lane.b32.xlu0 %v320_v7, %s1440_s18 }
 0x2be   :  { %v323_v8 = vpop.f32.mrf.mxu2  ;;  %v349_v9 = vpop.f32.mrf.mxu3 }
 0x2bf   :  { %369 = vrot.lane.b32.xlu2 %v323_v8, %s1440_s18  ;;  %367 = vrot.lane.b32.xlu1 %v349_v9, %s1440_s18 }
 0x2c6   :  { %v352_v10 = vpop.f32.mrf.mxu3  ;;  %v326_v12 = vpop.f32.mrf.mxu2 }
 0x2c7   :  { %371 = vrot.lane.b32.xlu2 %v352_v10, %s1440_s18 }
 0x2ce   :  { %v355_v14 = vpop.f32.mrf.mxu3  ;;  %v329_v15 = vpop.f32.mrf.mxu2 }
 0x2d6   :  { %v358_v20 = vpop.f32.mrf.mxu3 }
 0x319   :  { %v370_v16 = vpop.permute.xlu2 %369 }
 0x31a   :  { %v381_v17 = vsel %vm373_vm3, 0.0, %v370_v16 }
 0x31b   :  { %v384_v18 = vadd.f32 %v381_v17, %v329_v15 }
 0x31d   :  { %v392_v19 = vmul.f32 0.5, %v384_v18 }
 0x31f   :  { %1399 = vtanh.f32 %v392_v19 }
 0x320   :  { %1401 = vtanh.f32 %v384_v18 }
 0x321   :  { %v372_v21 = vpop.permute.xlu2 %371 }
 0x322   :  { %v375_v22 = vsel %vm373_vm3, %v370_v16, %v372_v21 }
 0x323   :  { %v385_v23 = vadd.f32 %v375_v22, %v358_v20 }
 0x325   :  { %v1400_v24 = vpop.eup %1399  ;;  %v393_v25 = vmul.f32 0.5, %v385_v23 }
 0x326   :  { %v400_v26 = vmul.f32 0.5, %v1400_v24  ;;  %v1402_v27 = vpop.eup %1401 }
 0x327   :  { %1403 = vtanh.f32 %v393_v25 }
 0x328   :  { %v404_v28 = vadd.f32 0.5, %v400_v26  ;;  %1405 = vtanh.f32 %v385_v23 }
 0x329   :  { %v366_v29 = vpop.permute.xlu0 %365 }
 0x32a   :  { %v408_v30 = vmul.f32 %v1402_v27, %v404_v28  ;;  %v380_v31 = vsel %vm373_vm3, 0.0, %v366_v29 }
 0x32b   :  { %v382_v32 = vadd.f32 %v380_v31, %v326_v12 }
 0x32c   :  { %441 = vmatpush.msrb.mxu0 %v408_v30 }
 0x32d   :  { %v1404_v33 = vpop.eup %1403  ;;  %v390_v34 = vmul.f32 0.5, %v382_v32 }
 0x32e   :  { %v401_v35 = vmul.f32 0.5, %v1404_v33  ;;  %v1406_v36 = vpop.eup %1405 }
 0x32f   :  { %1407 = vtanh.f32 %v390_v34 }
 0x330   :  { %v405_v37 = vadd.f32 0.5, %v401_v35  ;;  %1409 = vtanh.f32 %v382_v32 }
 0x331   :  { %v368_v38 = vpop.permute.xlu1 %367 }
 0x332   :  { %v409_v39 = vmul.f32 %v1406_v36, %v405_v37  ;;  %v374_v40 = vsel %vm373_vm3, %v366_v29, %v368_v38 }
 0x333   :  { %v383_v41 = vadd.f32 %v374_v40, %v355_v14 }
 0x334   :  { %468 = vmatpush.msra.mxu1 %v409_v39 }
 0x335   :  { %v1408_v42 = vpop.eup %1407  ;;  %v391_v43 = vmul.f32 0.5, %v383_v41 }
 0x336   :  { %v398_v44 = vmul.f32 0.5, %v1408_v42  ;;  %v1410_v45 = vpop.eup %1409 }
 0x337   :  { %1411 = vtanh.f32 %v391_v43 }
 0x338   :  { %v402_v46 = vadd.f32 0.5, %v398_v44  ;;  %1413 = vtanh.f32 %v383_v41 }
 0x33a   :  { %v406_v47 = vmul.f32 %v1410_v45, %v402_v46  ;;  %v1263_v45 = vld [vmem:[%s1836_s3 + $0x40] sm:$0xff] }
 0x33c   :  { %442 = vmatpush.msrb.mxu0 %v406_v47 }
 0x33d   :  { %v1412_v49 = vpop.eup %1411  ;;  %1243 = vmatmul.msk.f32.vlgmr.msrb.gmra.mxu0 %vm89_vm2, %v1239_v48 }
 0x33e   :  { %v399_v50 = vmul.f32 0.5, %v1412_v49  ;;  %v1414_v52 = vpop.eup %1413  ;;  %v1264_v49 = vld [vmem:[%s1836_s3 + $0x48] sm:$0xff] }
 0x340   :  { %v403_v51 = vadd.f32 0.5, %v399_v50 }
 0x342   :  { %v407_v53 = vmul.f32 %v1414_v52, %v403_v51 }
 0x344   :  { %469 = vmatpush.msra.mxu1 %v407_v53 }
 0x345   :  { %1244 = vmatmul.msk.f32.gmra.mxu0 %vm89_vm2, %v1240_v54  ;;  %1247 = vmatmul.msk.f32.vlgmr.msra.gmra.mxu1 %vm89_vm2, %v1239_v48 }
 0x34d   :  { %1248 = vmatmul.msk.f32.gmra.mxu1 %vm89_vm2, %v1240_v54  ;;  %1245 = vmatmul.msk.f32.gmra.mxu0 %vm89_vm2, %v1241_v55 }
 0x355   :  { %1249 = vmatmul.msk.f32.gmra.mxu1 %vm89_vm2, %v1241_v55  ;;  %1246 = vmatmul.msk.f32.gmra.mxu0 %vm89_vm2, %v1242_v56 }
 0x35d   :  { %1250 = vmatmul.msk.f32.gmra.mxu1 %vm89_vm2, %v1242_v56 }
 0x3ba   :  { %v444_v61 = vpop.f32.mrf.mxu0 }
 0x3bb   :  { %v1615_v5 = vadd.f32 %v444_v61, %v1539_v63  ;;  %v1252_v63 = vld [vmem:[%s1835_s2 + $0x48] sm:$0xff]  ;;  %v1266_v61 = vld [vmem:[%s1836_s3 + $0x58] sm:$0xff] }
 0x3c2   :  { %v447_v0 = vpop.f32.mrf.mxu0  ;;  %v471_v1 = vpop.f32.mrf.mxu1 }
 0x3c3   :  { %v1612_v4 = vadd.f32 %v447_v0, %v1536_v62  ;;  %v1627_v62 = vadd.f32 %v471_v1, %v1551_v3  ;;  %v1254_v3 = vld [vmem:[%s1835_s2 + $0x58] sm:$0xff] }
 0x3c5   :  { %520 = vmatpush.msra.mxu2 %v1612_v4 }
 0x3c7   :  { %521 = vmatpush.msra.mxu2 %v1615_v5 }
 0x3c8   :  { %1255 = vmatmul.msk.f32.vlgmr.msra.gmra.mxu2 %vm89_vm2, %v1251_v6 }
 0x3ca   :  { %v474_v7 = vpop.f32.mrf.mxu1  ;;  %v450_v8 = vpop.f32.mrf.mxu0 }
 0x3cb   :  { %v1624_v9 = vadd.f32 %v474_v7, %v1548_v2  ;;  %v1253_v2 = vld [vmem:[%s1835_s2 + $0x50] sm:$0xff] }
 0x3cd   :  { %549 = vmatpush.msra.mxu3 %v1624_v9 }
 0x3cf   :  { %550 = vmatpush.msra.mxu3 %v1627_v62 }
 0x3d0   :  { %1256 = vmatmul.msk.f32.gmra.mxu2 %vm89_vm2, %v1252_v63  ;;  %1259 = vmatmul.msk.f32.vlgmr.msra.gmra.mxu3 %vm89_vm2, %v1251_v6 }
 0x3d2   :  { %v477_v10 = vpop.f32.mrf.mxu1  ;;  %v452_v11 = vpop.f32.mrf.mxu0 }
 0x3d3   :  { %v1636_v12 = vadd.f32 %v477_v10, %v274_v59  ;;  %v1265_v59 = vld [vmem:[%s1836_s3 + $0x50] sm:$0xff] }
 0x3d8   :  { %1260 = vmatmul.msk.f32.gmra.mxu3 %vm89_vm2, %v1252_v63  ;;  %1257 = vmatmul.msk.f32.gmra.mxu2 %vm89_vm2, %v1253_v2  ;;  %v1275_v63 = vld [vmem:[%s1835_s2 + $0x60] sm:$0xff] }
 0x3da   :  { %v1678_v7 = vpop.f32.mrf.mxu1 }
 0x3e0   :  { %1258 = vmatmul.msk.f32.gmra.mxu2 %vm89_vm2, %v1254_v3  ;;  %1261 = vmatmul.msk.f32.gmra.mxu3 %vm89_vm2, %v1253_v2  ;;  %v1276_v2 = vld [vmem:[%s1835_s2 + $0x68] sm:$0xff] }
 0x3e8   :  { %1262 = vmatmul.msk.f32.gmra.mxu3 %vm89_vm2, %v1254_v3 }
 0x44b   :  { %v523_v13 = vpop.f32.mrf.mxu2 }
 0x44c   :  { %568 = vrot.lane.b32.xlu1 %v523_v13, %s1441_s13 }
 0x453   :  { %v526_v14 = vpop.f32.mrf.mxu2  ;;  %v552_v15 = vpop.f32.mrf.mxu3 }
 0x454   :  { %572 = vrot.lane.b32.xlu2 %v526_v14, %s1441_s13  ;;  %v1277_v14 = vld [vmem:[%s1835_s2 + $0x70] sm:$0xff] }
 0x45b   :  { %v555_v16 = vpop.f32.mrf.mxu3  ;;  %v529_v17 = vpop.f32.mrf.mxu2 }
 0x45c   :  { %570 = vrot.lane.b32.xlu2 %v552_v15, %s1441_s13  ;;  %574 = vrot.lane.b32.xlu0 %v555_v16, %s1441_s13  ;;  %v1278_v15 = vld [vmem:[%s1835_s2 + $0x78] sm:$0xff] }
 0x463   :  { %v532_v18 = vpop.f32.mrf.mxu2  ;;  %v558_v33 = vpop.f32.mrf.mxu3 }
 0x46b   :  { %v561_v40 = vpop.f32.mrf.mxu3 }
 0x4ae   :  { %v573_v19 = vpop.permute.xlu2 %572 }
 0x4af   :  { %v584_v20 = vsel %vm576_vm4, 0.0, %v573_v19 }
 0x4b0   :  { %v587_v21 = vadd.f32 %v584_v20, %v532_v18 }
 0x4b2   :  { %v595_v22 = vmul.f32 0.5, %v587_v21 }
 0x4b4   :  { %1415 = vtanh.f32 %v595_v22 }
 0x4b5   :  { %1417 = vtanh.f32 %v587_v21 }
 0x4b6   :  { %v571_v32 = vpop.permute.xlu2 %570 }
 0x4ba   :  { %v1416_v23 = vpop.eup %1415 }
 0x4bb   :  { %v603_v24 = vmul.f32 0.5, %v1416_v23  ;;  %v1418_v25 = vpop.eup %1417 }
 0x4bd   :  { %v607_v26 = vadd.f32 0.5, %v603_v24 }
 0x4be   :  { %v569_v27 = vpop.permute.xlu1 %568 }
 0x4bf   :  { %v611_v28 = vmul.f32 %v1418_v25, %v607_v26  ;;  %v583_v29 = vsel %vm576_vm4, 0.0, %v569_v27  ;;  %v577_v34 = vsel %vm576_vm4, %v569_v27, %v571_v32 }
 0x4c0   :  { %v585_v30 = vadd.f32 %v583_v29, %v529_v17  ;;  %v586_v35 = vadd.f32 %v577_v34, %v558_v33 }
 0x4c1   :  { %644 = vmatpush.msra.mxu0 %v611_v28 }
 0x4c2   :  { %v593_v31 = vmul.f32 0.5, %v585_v30  ;;  %v594_v39 = vmul.f32 0.5, %v586_v35 }
 0x4c4   :  { %1419 = vtanh.f32 %v593_v31 }
 0x4c5   :  { %1421 = vtanh.f32 %v585_v30 }
 0x4c6   :  { %1423 = vtanh.f32 %v594_v39  ;;  %v1290_v39 = vld [vmem:[%s1836_s3 + $0x78] sm:$0xff] }
 0x4ca   :  { %v1420_v36 = vpop.eup %1419 }
 0x4cb   :  { %v601_v37 = vmul.f32 0.5, %v1420_v36  ;;  %v1422_v38 = vpop.eup %1421  ;;  %v1287_v36 = vld [vmem:[%s1836_s3 + $0x60] sm:$0xff] }
 0x4cc   :  { %v1424_v48 = vpop.eup %1423 }
 0x4cd   :  { %v605_v41 = vadd.f32 0.5, %v601_v37  ;;  %v602_v50 = vmul.f32 0.5, %v1424_v48  ;;  %v1288_v37 = vld [vmem:[%s1836_s3 + $0x68] sm:$0xff] }
 0x4ce   :  { %v575_v42 = vpop.permute.xlu0 %574 }
 0x4cf   :  { %v578_v43 = vsel %vm576_vm4, %v573_v19, %v575_v42  ;;  %v609_v44 = vmul.f32 %v1422_v38, %v605_v41  ;;  %v606_v53 = vadd.f32 0.5, %v602_v50  ;;  %v1289_v38 = vld [vmem:[%s1836_s3 + $0x70] sm:$0xff]  ;;  %s1442_s3 = smov 80  }
 0x4d0   :  { %v588_v46 = vadd.f32 %v578_v43, %v561_v40 }
 0x4d1   :  { %645 = vmatpush.msra.mxu0 %v609_v44 }
 0x4d2   :  { %v596_v47 = vmul.f32 0.5, %v588_v46  ;;  %1267 = vmatmul.msk.f32.vlgmr.msra.gmra.mxu0 %vm89_vm2, %v1263_v45 }
 0x4d4   :  { %1425 = vtanh.f32 %v596_v47 }
 0x4d5   :  { %1427 = vtanh.f32 %v588_v46 }
 0x4d6   :  { %1429 = vtanh.f32 %v586_v35 }
 0x4da   :  { %v1426_v51 = vpop.eup %1425  ;;  %1268 = vmatmul.msk.f32.gmra.mxu0 %vm89_vm2, %v1264_v49 }
 0x4db   :  { %v604_v52 = vmul.f32 0.5, %v1426_v51  ;;  %v1428_v55 = vpop.eup %1427 }
 0x4dc   :  { %v1430_v57 = vpop.eup %1429 }
 0x4dd   :  { %v608_v54 = vadd.f32 0.5, %v604_v52  ;;  %v610_v58 = vmul.f32 %v1430_v57, %v606_v53  ;;  %v827_v57 = vld [vmem:[%s1837_s4 + $0x10] sm:$0xff] }
 0x4df   :  { %v612_v56 = vmul.f32 %v1428_v55, %v608_v54  ;;  %v826_v54 = vld [vmem:[%s1837_s4 + $0x8] sm:$0xff] }
 0x4e1   :  { %671 = vmatpush.msrb.mxu1 %v612_v56 }
 0x4e2   :  { %1269 = vmatmul.msk.f32.gmra.mxu0 %vm89_vm2, %v1265_v59 }
 0x4e3   :  { %672 = vmatpush.msrb.mxu1 %v610_v58 }
 0x4e4   :  { %1271 = vmatmul.msk.f32.vlgmr.msrb.gmra.mxu1 %vm89_vm2, %v1263_v45  ;;  %v488_v45 = vadd.f32 %v1678_v7, %v1609_v60  ;;  %v825_v60 = vld [vmem:[%s1837_s4] sm:$0xff] }
 0x4ea   :  { %1270 = vmatmul.msk.f32.gmra.mxu0 %vm89_vm2, %v1266_v61 }
 0x4ec   :  { %1272 = vmatmul.msk.f32.gmra.mxu1 %vm89_vm2, %v1264_v49 }
 0x4f4   :  { %1273 = vmatmul.msk.f32.gmra.mxu1 %vm89_vm2, %v1265_v59 }
 0x4fc   :  { %1274 = vmatmul.msk.f32.gmra.mxu1 %vm89_vm2, %v1266_v61 }
 0x54f   :  { %v647_v0 = vpop.f32.mrf.mxu0 }
 0x550   :  { %v686_v8 = vadd.f32 %v647_v0, %v1615_v5 }
 0x557   :  { %v650_v1 = vpop.f32.mrf.mxu0 }
 0x558   :  { %v688_v6 = vadd.f32 %v650_v1, %v1612_v4  ;;  %v1316_v1 = vld [vmem:[%s1837_s4 + $0x60] sm:$0xff] }
 0x55a   :  { %723 = vmatpush.msrb.mxu2 %v688_v6 }
 0x55c   :  { %724 = vmatpush.msrb.mxu2 %v686_v8  ;;  %v1304_v8 = vld [vmem:[%s1837_s4 + $0x30] sm:$0xff] }
 0x55d   :  { %1279 = vmatmul.msk.f32.vlgmr.msrb.gmra.mxu2 %vm89_vm2, %v1275_v63 }
 0x55f   :  { %v653_v10 = vpop.f32.mrf.mxu0 }
 0x560   :  { %v1295_v10 = vld [vmem:[%s1837_s4 + $0x18] sm:$0xff] }
 0x561   :  { %v674_v11 = vpop.f32.mrf.mxu1 }
 0x562   :  { %v687_v13 = vadd.f32 %v674_v11, %v1627_v62 }
 0x565   :  { %1280 = vmatmul.msk.f32.gmra.mxu2 %vm89_vm2, %v1276_v2 }
 0x567   :  { %v655_v4 = vpop.f32.mrf.mxu0 }
 0x569   :  { %v677_v3 = vpop.f32.mrf.mxu1 }
 0x56a   :  { %v689_v5 = vadd.f32 %v677_v3, %v1624_v9 }
 0x56c   :  { %750 = vmatpush.msrb.mxu3 %v689_v5 }
 0x56d   :  { %1281 = vmatmul.msk.f32.gmra.mxu2 %vm89_vm2, %v1277_v14 }
 0x56e   :  { %751 = vmatpush.msrb.mxu3 %v687_v13  ;;  %v1317_v13 = vld [vmem:[%s1837_s4 + $0x68] sm:$0xff] }
 0x56f   :  { %1283 = vmatmul.msk.f32.vlgmr.msrb.gmra.mxu3 %vm89_vm2, %v1275_v63 }
 0x571   :  { %v680_v42 = vpop.f32.mrf.mxu1 }
 0x572   :  { %v690_v46 = vadd.f32 %v680_v42, %v1636_v12 }
 0x575   :  { %1282 = vmatmul.msk.f32.gmra.mxu2 %vm89_vm2, %v1278_v15 }
 0x577   :  { %1284 = vmatmul.msk.f32.gmra.mxu3 %vm89_vm2, %v1276_v2 }
 0x579   :  { %v683_v44 = vpop.f32.mrf.mxu1 }
 0x57a   :  { %v691_v47 = vadd.f32 %v683_v44, %v488_v45 }
 0x57f   :  { %1285 = vmatmul.msk.f32.gmra.mxu3 %vm89_vm2, %v1277_v14 }
 0x587   :  { %1286 = vmatmul.msk.f32.gmra.mxu3 %vm89_vm2, %v1278_v15 }
 0x5e0   :  { %v726_v9 = vpop.f32.mrf.mxu2 }
 0x5e8   :  { %v729_v62 = vpop.f32.mrf.mxu2 }
 0x5f0   :  { %v732_v17 = vpop.f32.mrf.mxu2 }
 0x5f1   :  { %v1322_v17 = vld [vmem:[%s1837_s4 + $0x78] sm:$0xff] }
 0x5f2   :  { %v753_v16 = vpop.f32.mrf.mxu3 }
 0x5f3   :  { %v1296_v16 = vld [vmem:[%s1837_s4 + $0x20] sm:$0xff] }
 0x5f8   :  { %v734_v19 = vpop.f32.mrf.mxu2 }
 0x5f9   :  { %v1318_v19 = vld [vmem:[%s1837_s4 + $0x70] sm:$0xff] }
 0x5fa   :  { %v755_v18 = vpop.f32.mrf.mxu3 }
 0x602   :  { %v757_v20 = vpop.f32.mrf.mxu3 }
 0x603   :  { %v763_v21 = vadd.f32 %v757_v20, %v726_v9  ;;  %v1305_v9 = vld [vmem:[%s1837_s4 + $0x38] sm:$0xff] }
 0x605   :  { %v767_v22 = vmul.f32 0.5, %v763_v21 }
 0x607   :  { %1431 = vtanh.f32 %v767_v22 }
 0x60a   :  { %v760_v23 = vpop.f32.mrf.mxu3 }
 0x60b   :  { %v764_v24 = vadd.f32 %v760_v23, %v729_v62  ;;  %v1297_v23 = vld [vmem:[%s1837_s4 + $0x28] sm:$0xff] }
 0x60d   :  { %v768_v25 = vmul.f32 0.5, %v764_v24  ;;  %v1432_v26 = vpop.eup %1431 }
 0x60e   :  { %v771_v27 = vmul.f32 0.5, %v1432_v26  ;;  %v1310_v26 = vld [vmem:[%s1837_s4 + $0x48] sm:$0xff] }
 0x60f   :  { %1433 = vtanh.f32 %v768_v25  ;;  %v1328_v25 = vld [vmem:[%s1837_s4 + $0x90] sm:$0xff] }
 0x610   :  { %1435 = vtanh.f32 %v764_v24  ;;  %v773_v30 = vadd.f32 0.5, %v771_v27  ;;  %v1323_v24 = vld [vmem:[%s1837_s4 + $0x80] sm:$0xff]  ;;  %v1324_v27 = vld [vmem:[%s1837_s4 + $0x88] sm:$0xff] }
 0x611   :  { %1437 = vtanh.f32 %v763_v21  ;;  %v1306_v21 = vld [vmem:[%s1837_s4 + $0x40] sm:$0xff] }
 0x615   :  { %v1434_v28 = vpop.eup %1433 }
 0x616   :  { %v772_v29 = vmul.f32 0.5, %v1434_v28  ;;  %v1436_v32 = vpop.eup %1435  ;;  %v1329_v28 = vld [vmem:[%s1837_s4 + $0x98] sm:$0xff] }
 0x617   :  { %v1438_v34 = vpop.eup %1437 }
 0x618   :  { %v774_v31 = vadd.f32 0.5, %v772_v29  ;;  %v775_v35 = vmul.f32 %v1438_v34, %v773_v30  ;;  %v1311_v29 = vld [vmem:[%s1837_s4 + $0x50] sm:$0xff]  ;;  %v1330_v30 = vld [vmem:[%s1837_s4 + $0xa0] sm:$0xff]  ;;  %v1336_v34 = vld [vmem:[%s1837_s4 + $0xb8] sm:$0xff] }
 0x61a   :  { %v776_v33 = vmul.f32 %v1436_v32, %v774_v31  ;;  %v1312_v31 = vld [vmem:[%s1837_s4 + $0x58] sm:$0xff]  ;;  %v1334_v32 = vld [vmem:[%s1837_s4 + $0xa8] sm:$0xff] }
 0x61c   :  { %808 = vmatpush.msrb.mxu0 %v776_v33  ;;  %v1335_v33 = vld [vmem:[%s1837_s4 + $0xb0] sm:$0xff] }
 0x61e   :  { %809 = vmatpush.msrb.mxu0 %v775_v35 }
 0x61f   :  { %1291 = vmatmul.msk.f32.vlgmr.msrb.gmra.mxu0 %vm89_vm2, %v1287_v36 }
 0x627   :  { %1292 = vmatmul.msk.f32.gmra.mxu0 %vm89_vm2, %v1288_v37 }
 0x62f   :  { %1293 = vmatmul.msk.f32.gmra.mxu0 %vm89_vm2, %v1289_v38 }
 0x637   :  { %1294 = vmatmul.msk.f32.gmra.mxu0 %vm89_vm2, %v1290_v39 }
 0x69c   :  { %v811_v40 = vpop.f32.mrf.mxu0 }
 0x6a4   :  { %v813_v41 = vpop.f32.mrf.mxu0 }
 0x6ac   :  { %v815_v43 = vpop.f32.mrf.mxu0 }
 0x6ad   :  { %v821_v48 = vadd.f32 %v815_v43, %v690_v46 }
 0x6af   :  { %v823_v51 = vmax.f32 %v821_v48, 0.0 }
 0x6b4   :  { %v818_v49 = vpop.f32.mrf.mxu0 }
 0x6b5   :  { %v822_v50 = vadd.f32 %v818_v49, %v691_v47 }
 0x6b7   :  { %v824_v52 = vmax.f32 %v822_v50, 0.0 }
 0x6b9   :  { %898 = vmatpush.msra.mxu2 %v824_v52  ;;  %v1358_v53 = vpack.i.bf16 %v823_v51, %v824_v52 }
 0x6bb   :  { %1359 = vrot.lane.b32.xlu2 %v1358_v53, %s1442_s3  ;;  %1354 = vrot.lane.b32.xlu1 %v1358_v53, %s1443_s12 }
 0x6bc   :  { %1349 = vrot.lane.b32.xlu0 %v1358_v53, %s1444_s14  ;;  %899 = vmatpush.msra.mxu2 %v823_v51 }
 0x6bd   :  { %1301 = vmatmul.msk.f32.vlgmr.msra.gmra.mxu2 %vm89_vm2, %v825_v60 }
 0x6c3   :  { %1374 = vrot.lane.b32.xlu2 %v1358_v53, %s1441_s13  ;;  %1369 = vrot.lane.b32.xlu1 %v1358_v53, %s1440_s18 }
 0x6c4   :  { %1364 = vrot.lane.b32.xlu0 %v1358_v53, %s1445_s15 }
 0x6c5   :  { %1302 = vmatmul.msk.f32.gmra.mxu2 %vm89_vm2, %v826_v54 }
 0x6cc   :  { %1379 = vrot.lane.b32.xlu0 %v1358_v53, %s1439_s30 }
 0x6cd   :  { %1303 = vmatmul.msk.f32.gmra.mxu2 %vm89_vm2, %v827_v57 }
 0x715   :  { %v1360_v12 = vpop.permute.xlu2 %1359 }
 0x716   :  { %v1361_v11 = vunpack.i.l.bf16 %v1360_v12  ;;  %v1362_v2 = vunpack.i.h.bf16 %v1360_v12 }
 0x71d   :  { %v1375_v55 = vpop.permute.xlu2 %1374 }
 0x71e   :  { %v1376_v56 = vunpack.i.l.bf16 %v1375_v55  ;;  %v1377_v58 = vunpack.i.h.bf16 %v1375_v55 }
 0x720   :  { %1039 = vmatpush.msra.mxu0 %v1376_v56 }
 0x722   :  { %1040 = vmatpush.msra.mxu0 %v1377_v58 }
 0x723   :  { %1319 = vmatmul.msk.f32.vlgmr.msra.gmra.mxu0 %vm89_vm2, %v1316_v1 }
 0x72b   :  { %1320 = vmatmul.msk.f32.gmra.mxu0 %vm89_vm2, %v1317_v13 }
 0x72d   :  { %v1355_v59 = vpop.permute.xlu1 %1354 }
 0x72e   :  { %v1356_v61 = vunpack.i.l.bf16 %v1355_v59  ;;  %v1350_v0 = vpop.permute.xlu0 %1349  ;;  %v1357_v7 = vunpack.i.h.bf16 %v1355_v59 }
 0x72f   :  { %v1351_v6 = vunpack.i.l.bf16 %v1350_v0  ;;  %v1352_v63 = vunpack.i.h.bf16 %v1350_v0 }
 0x730   :  { %943 = vmatpush.msra.mxu3 %v1356_v61 }
 0x731   :  { %863 = vmatpush.msra.mxu1 %v1351_v6 }
 0x732   :  { %944 = vmatpush.msra.mxu3 %v1357_v7 }
 0x733   :  { %864 = vmatpush.msra.mxu1 %v1352_v63  ;;  %1307 = vmatmul.msk.f32.vlgmr.msra.gmra.mxu3 %vm89_vm2, %v1304_v8 }
 0x734   :  { %1298 = vmatmul.msk.f32.vlgmr.msra.gmra.mxu1 %vm89_vm2, %v1295_v10  ;;  %1321 = vmatmul.msk.f32.gmra.mxu0 %vm89_vm2, %v1318_v19 }
 0x735   :  { %991 = vmatpush.msrb.mxu1 %v1361_v11  ;;  %v1370_v4 = vpop.permute.xlu1 %1369 }
 0x736   :  { %v1371_v3 = vunpack.i.l.bf16 %v1370_v4  ;;  %v1365_v5 = vpop.permute.xlu0 %1364  ;;  %v1372_v15 = vunpack.i.h.bf16 %v1370_v4 }
 0x737   :  { %v1366_v14 = vunpack.i.l.bf16 %v1365_v5  ;;  %992 = vmatpush.msrb.mxu1 %v1362_v2  ;;  %v1367_v62 = vunpack.i.h.bf16 %v1365_v5 }
 0x738   :  { %1135 = vmatpush.msrb.mxu3 %v1371_v3 }
 0x739   :  { %1087 = vmatpush.msrb.mxu2 %v1366_v14 }
 0x73a   :  { %1136 = vmatpush.msrb.mxu3 %v1372_v15 }
 0x73b   :  { %1088 = vmatpush.msrb.mxu2 %v1367_v62  ;;  %1308 = vmatmul.msk.f32.gmra.mxu3 %vm89_vm2, %v1305_v9 }
 0x73c   :  { %1299 = vmatmul.msk.f32.gmra.mxu1 %vm89_vm2, %v1296_v16  ;;  %1325 = vmatmul.msk.f32.vlgmr.msrb.gmra.mxu2 %vm89_vm2, %v1322_v17 }
 0x73e   :  { %v1380_v18 = vpop.permute.xlu0 %1379 }
 0x73f   :  { %v1381_v20 = vunpack.i.l.bf16 %v1380_v18  ;;  %v1382_v22 = vunpack.i.h.bf16 %v1380_v18 }
 0x740   :  { %v901_v37 = vpop.f32.mrf.mxu2 }
 0x741   :  { %1183 = vmatpush.msra.mxu1 %v1381_v20 }
 0x743   :  { %1184 = vmatpush.msra.mxu1 %v1382_v22  ;;  %1309 = vmatmul.msk.f32.gmra.mxu3 %vm89_vm2, %v1306_v21 }
 0x744   :  { %1300 = vmatmul.msk.f32.gmra.mxu1 %vm89_vm2, %v1297_v23  ;;  %1326 = vmatmul.msk.f32.gmra.mxu2 %vm89_vm2, %v1323_v24 }
 0x748   :  { %v904_v40 = vpop.f32.mrf.mxu2 }
 0x74b   :  { %1331 = vmatmul.msk.f32.vlgmr.msrb.gmra.mxu3 %vm89_vm2, %v1328_v25 }
 0x74c   :  { %1313 = vmatmul.msk.f32.vlgmr.msrb.gmra.mxu1 %vm89_vm2, %v1310_v26  ;;  %1327 = vmatmul.msk.f32.gmra.mxu2 %vm89_vm2, %v1324_v27 }
 0x750   :  { %v907_v43 = vpop.f32.mrf.mxu2 }
 0x753   :  { %1332 = vmatmul.msk.f32.gmra.mxu3 %vm89_vm2, %v1329_v28 }
 0x754   :  { %1314 = vmatmul.msk.f32.gmra.mxu1 %vm89_vm2, %v1311_v29 }
 0x75b   :  { %1333 = vmatmul.msk.f32.gmra.mxu3 %vm89_vm2, %v1330_v30 }
 0x75c   :  { %1315 = vmatmul.msk.f32.gmra.mxu1 %vm89_vm2, %v1312_v31 }
 0x764   :  { %1337 = vmatmul.msk.f32.vlgmr.msra.gmra.mxu1 %vm89_vm2, %v1334_v32 }
 0x76c   :  { %1338 = vmatmul.msk.f32.gmra.mxu1 %vm89_vm2, %v1335_v33 }
 0x774   :  { %1339 = vmatmul.msk.f32.gmra.mxu1 %vm89_vm2, %v1336_v34 }
 0x7a0   :  { %v1042_v47 = vpop.f32.mrf.mxu0 }
 0x7a8   :  { %v1045_v54 = vpop.f32.mrf.mxu0 }
 0x7b1   :  { %v866_v35 = vpop.f32.mrf.mxu1  ;;  %v1048_v10 = vpop.f32.mrf.mxu0 }
 0x7b2   :  { %v902_v45 = vadd.f32 %v901_v37, %v866_v35 }
 0x7b6   :  { %v946_v38 = vpop.f32.mrf.mxu3 }
 0x7b7   :  { %v955_v48 = vadd.f32 %v946_v38, %v902_v45 }
 0x7b9   :  { %v869_v36 = vpop.f32.mrf.mxu1 }
 0x7ba   :  { %v905_v51 = vadd.f32 %v904_v40, %v869_v36 }
 0x7be   :  { %v949_v41 = vpop.f32.mrf.mxu3 }
 0x7bf   :  { %v1090_v50 = vpop.f32.mrf.mxu2  ;;  %v956_v12 = vadd.f32 %v949_v41, %v905_v51 }
 0x7c1   :  { %v872_v39 = vpop.f32.mrf.mxu1 }
 0x7c2   :  { %v908_v58 = vadd.f32 %v907_v43, %v872_v39 }
 0x7c6   :  { %v952_v44 = vpop.f32.mrf.mxu3 }
 0x7c7   :  { %v1093_v57 = vpop.f32.mrf.mxu2  ;;  %v957_v1 = vadd.f32 %v952_v44, %v908_v58 }
 0x7c9   :  { %v994_v42 = vpop.f32.mrf.mxu1 }
 0x7ca   :  { %v1003_v49 = vadd.f32 %v994_v42, %v955_v48 }
 0x7cc   :  { %v1051_v52 = vadd.f32 %v1042_v47, %v1003_v49 }
 0x7ce   :  { %v1138_v53 = vpop.f32.mrf.mxu3  ;;  %v1099_v56 = vadd.f32 %v1090_v50, %v1051_v52 }
 0x7cf   :  { %v1096_v4 = vpop.f32.mrf.mxu2 }
 0x7d0   :  { %v1147_v59 = vadd.f32 %v1138_v53, %v1099_v56 }
 0x7d1   :  { %v997_v46 = vpop.f32.mrf.mxu1 }
 0x7d2   :  { %v1004_v55 = vadd.f32 %v997_v46, %v956_v12 }
 0x7d4   :  { %v1052_v61 = vadd.f32 %v1045_v54, %v1004_v55 }
 0x7d6   :  { %v1141_v7 = vpop.f32.mrf.mxu3  ;;  %v1100_v63 = vadd.f32 %v1093_v57, %v1052_v61 }
 0x7d8   :  { %v1148_v11 = vadd.f32 %v1141_v7, %v1100_v63 }
 0x7d9   :  { %v1000_v60 = vpop.f32.mrf.mxu1 }
 0x7da   :  { %v1005_v8 = vadd.f32 %v1000_v60, %v957_v1 }
 0x7dc   :  { %v1053_v2 = vadd.f32 %v1048_v10, %v1005_v8 }
 0x7de   :  { %v1101_v13 = vadd.f32 %v1096_v4, %v1053_v2  ;;  %v1144_v14 = vpop.f32.mrf.mxu3 }
 0x7e0   :  { %v1149_v15 = vadd.f32 %v1144_v14, %v1101_v13 }
 0x7e1   :  { %v1186_v0 = vpop.f32.mrf.mxu1 }
 0x7e2   :  { %v1195_v6 = vadd.f32 %v1186_v0, %v1147_v59 }
 0x7e4   :  { %1198 = vst.msk [vmem:[%s1838_s5] sm:$0xff] %vm89_vm2, %v1195_v6 }
 0x7e9   :  { %v1189_v3 = vpop.f32.mrf.mxu1 }
 0x7ea   :  { %v1196_v5 = vadd.f32 %v1189_v3, %v1148_v11 }
 0x7ec   :  { %1199 = vst.msk [vmem:[%s1838_s5 + $0x8] sm:$0xff] %vm89_vm2, %v1196_v5 }
 0x7f1   :  { %v1192_v9 = vpop.f32.mrf.mxu1 }
 0x7f2   :  { %v1197_v62 = vadd.f32 %v1192_v9, %v1149_v15 }
 0x7f4   :  { %1200 = vst.msk [vmem:[%s1838_s5 + $0x10] sm:$0xff] %vm89_vm2, %v1197_v62 }

</bundles_post_ra>
